<compile_context>
chip_gen: v6e
topology: v6e:2x2x1
jax: 0.10.0
libtpu: 0.0.40
codegen_flags: <defaults>
</compile_context>

<pallas_src>
import functools

import jax
import jax.numpy as jnp
from jax.experimental import pallas as pl
from jax.experimental.pallas import tpu as pltpu

BN_EPS = 1e-5


def _conv3x3_bn_relu_kernel(x_ref, w_ref, b_ref, o_ref, *, wp, lo):
    """x_ref: (C_in_p, L)        zero-padded input, channel-major, flat (b, hp, wp)
       w_ref: (9, C_out, C_in_p) BN-scale-folded weights, tap t = ky*3 + kx
       b_ref: (C_out, 1)         folded BN bias
       o_ref: (C_out, Lo)        output on the padded (b, hp, wp) grid
    """
    c_out = o_ref.shape[0]
    acc = jnp.zeros((c_out, lo), jnp.float32)
    for ky in range(3):
        for kx in range(3):
            off = ky * wp + kx                       # flat shift of this tap
            acc = acc + jnp.dot(w_ref[ky * 3 + kx],
                                x_ref[:, off:off + lo],
                                preferred_element_type=jnp.float32)
    o_ref[...] = jnp.maximum(acc + b_ref[...], 0.0)


@jax.jit
def conv_layer(x_nchw, params):
    """Forward pass of ConvLayer. Input (B, C_in, H, W) -> output (B, C_out, H, W)."""
    w, g, b, m, v = (params[k] for k in ("w", "g", "b", "m", "v"))
    B, C_in, H, W = x_nchw.shape
    C_out = w.shape[0]
    Hp, Wp = H + 2, W + 2
    Lo = B * Hp * Wp                            # output length on the padded grid
    max_off = 2 * Wp + 2                        # largest tap shift
    L = ((Lo + max_off + 127) // 128) * 128     # lane-padded input length
    C_in_p = ((C_in + 7) // 8) * 8              # sublane-aligned contraction dim

    # Input: pad channels + 1-pixel spatial halo, channel-major, flattened, lane-padded.
    xp = jnp.pad(x_nchw.astype(jnp.float32),
                 ((0, 0), (0, C_in_p - C_in), (1, 1), (1, 1)))
    xflat = jnp.transpose(xp, (1, 0, 2, 3)).reshape(C_in_p, Lo)
    xflat = jnp.pad(xflat, ((0, 0), (0, L - Lo)))

    # Fold BN (running stats): bn(conv(x, w)) == conv(x, w*scale) + bias.
    scale = g / jnp.sqrt(v + BN_EPS)
    w_f = w.astype(jnp.float32) * scale[:, None, None, None]      # (C_out, C_in, 3, 3)
    w_f = jnp.pad(w_f, ((0, 0), (0, C_in_p - C_in), (0, 0), (0, 0)))
    w_taps = jnp.transpose(w_f, (2, 3, 0, 1)).reshape(9, C_out, C_in_p)
    bias = (b - m * scale).reshape(C_out, 1)

    out_flat = pl.pallas_call(
        functools.partial(_conv3x3_bn_relu_kernel, wp=Wp, lo=Lo),
        out_shape=jax.ShapeDtypeStruct((C_out, Lo), jnp.float32),
        in_specs=[pl.BlockSpec(memory_space=pltpu.MemorySpace.VMEM)] * 3,
        out_specs=pl.BlockSpec(memory_space=pltpu.MemorySpace.VMEM),
    )(xflat, w_taps, bias)

    # Drop the halo rows/cols of the padded output grid and go back to NCHW.
    out = out_flat.reshape(C_out, B, Hp, Wp)[:, :, :H, :W]
    return jnp.transpose(out, (1, 0, 2, 3))


# ----------------------------- reference (JAX) ------------------------------ #

def conv_layer_ref(x, p):
    y = jax.lax.conv_general_dilated(
        x, p["w"], (1, 1), ((1, 1), (1, 1)),
        dimension_numbers=("NCHW", "OIHW", "NCHW"))
    g, b, m, v = (t[None, :, None, None] for t in (p["g"], p["b"], p["m"], p["v"]))
    return jax.nn.relu((y - m) / jnp.sqrt(v + BN_EPS) * g + b)


# --------------------------------- main ------------------------------------- #

if __name__ == "__main__":
    key = jax.random.PRNGKey(0)
    keys = jax.random.split(key, 6)
    B, state_dim, n_kernel, H, W = 2, 4, 8, 16, 16

    params = {
        "w": 0.1 * jax.random.normal(keys[0], (n_kernel, state_dim, 3, 3), jnp.float32),
        "g": 1.0 + 0.1 * jax.random.normal(keys[1], (n_kernel,), jnp.float32),
        "b": 0.1 * jax.random.normal(keys[2], (n_kernel,), jnp.float32),
        "m": 0.1 * jax.random.normal(keys[3], (n_kernel,), jnp.float32),
        "v": jax.random.uniform(keys[4], (n_kernel,), jnp.float32, 0.5, 1.5),
    }
    x = jax.random.normal(keys[5], (B, state_dim, H, W), jnp.float32)

    out = jax.block_until_ready(conv_layer(x, params))
    ref = jax.block_until_ready(conv_layer_ref(x, params))

    assert out.shape == (B, n_kernel, H, W)
    assert jnp.allclose(out, ref, atol=1e-4, rtol=1e-4), (
        f"max abs err {jnp.max(jnp.abs(out - ref))}")

    print("KERNEL_OK")
</pallas_src>

<mosaic_0001>
module attributes {stable_mosaic.version = 11 : i64} {
  func.func @_conv3x3_bn_relu_kernel(%arg0: memref<8x768xf32, #tpu.memory_space<vmem>>, %arg1: memref<9x8x8xf32, #tpu.memory_space<vmem>>, %arg2: memref<8x1xf32, #tpu.memory_space<vmem>>, %arg3: memref<8x648xf32, #tpu.memory_space<vmem>>) attributes {dimension_semantics = [], scalar_prefetch = 0 : i64, scratch_operands = 0 : i64, tpu.core_type = #tpu.core_type<tc>} {
    %cst = arith.constant 0.000000e+00 : f32
    %0 = vector.broadcast %cst : f32 to vector<8x648xf32>
    %c0 = arith.constant 0 : index
    %c0_0 = arith.constant 0 : index
    %c0_1 = arith.constant 0 : index
    %1 = vector.load %arg1[%c0, %c0_0, %c0_1] : memref<9x8x8xf32, #tpu.memory_space<vmem>>, vector<1x8x8xf32>
    %2 = vector.shape_cast %1 : vector<1x8x8xf32> to vector<8x8xf32>
    %c0_2 = arith.constant 0 : index
    %c0_3 = arith.constant 0 : index
    %3 = vector.load %arg0[%c0_2, %c0_3] : memref<8x768xf32, #tpu.memory_space<vmem>>, vector<8x648xf32>
    %cst_4 = arith.constant dense<0.000000e+00> : vector<8x648xf32>
    %4 = tpu.matmul %2, %3, %cst_4 {dimension_numbers = #tpu.dot_dimension_numbers<[1], [0], [0], [1], [0, 0, 1, 1], [], []>} : vector<8x8xf32>, vector<8x648xf32>, vector<8x648xf32> -> vector<8x648xf32>
    %5 = arith.addf %0, %4 : vector<8x648xf32>
    %c1 = arith.constant 1 : index
    %c0_5 = arith.constant 0 : index
    %c0_6 = arith.constant 0 : index
    %6 = vector.load %arg1[%c1, %c0_5, %c0_6] : memref<9x8x8xf32, #tpu.memory_space<vmem>>, vector<1x8x8xf32>
    %7 = vector.shape_cast %6 : vector<1x8x8xf32> to vector<8x8xf32>
    %c0_7 = arith.constant 0 : index
    %c1_8 = arith.constant 1 : index
    %8 = vector.load %arg0[%c0_7, %c1_8] : memref<8x768xf32, #tpu.memory_space<vmem>>, vector<8x648xf32>
    %cst_9 = arith.constant dense<0.000000e+00> : vector<8x648xf32>
    %9 = tpu.matmul %7, %8, %cst_9 {dimension_numbers = #tpu.dot_dimension_numbers<[1], [0], [0], [1], [0, 0, 1, 1], [], []>} : vector<8x8xf32>, vector<8x648xf32>, vector<8x648xf32> -> vector<8x648xf32>
    %10 = arith.addf %5, %9 : vector<8x648xf32>
    %c2 = arith.constant 2 : index
    %c0_10 = arith.constant 0 : index
    %c0_11 = arith.constant 0 : index
    %11 = vector.load %arg1[%c2, %c0_10, %c0_11] : memref<9x8x8xf32, #tpu.memory_space<vmem>>, vector<1x8x8xf32>
    %12 = vector.shape_cast %11 : vector<1x8x8xf32> to vector<8x8xf32>
    %c0_12 = arith.constant 0 : index
    %c2_13 = arith.constant 2 : index
    %13 = vector.load %arg0[%c0_12, %c2_13] : memref<8x768xf32, #tpu.memory_space<vmem>>, vector<8x648xf32>
    %cst_14 = arith.constant dense<0.000000e+00> : vector<8x648xf32>
    %14 = tpu.matmul %12, %13, %cst_14 {dimension_numbers = #tpu.dot_dimension_numbers<[1], [0], [0], [1], [0, 0, 1, 1], [], []>} : vector<8x8xf32>, vector<8x648xf32>, vector<8x648xf32> -> vector<8x648xf32>
    %15 = arith.addf %10, %14 : vector<8x648xf32>
    %c3 = arith.constant 3 : index
    %c0_15 = arith.constant 0 : index
    %c0_16 = arith.constant 0 : index
    %16 = vector.load %arg1[%c3, %c0_15, %c0_16] : memref<9x8x8xf32, #tpu.memory_space<vmem>>, vector<1x8x8xf32>
    %17 = vector.shape_cast %16 : vector<1x8x8xf32> to vector<8x8xf32>
    %c0_17 = arith.constant 0 : index
    %c18 = arith.constant 18 : index
    %18 = vector.load %arg0[%c0_17, %c18] : memref<8x768xf32, #tpu.memory_space<vmem>>, vector<8x648xf32>
    %cst_18 = arith.constant dense<0.000000e+00> : vector<8x648xf32>
    %19 = tpu.matmul %17, %18, %cst_18 {dimension_numbers = #tpu.dot_dimension_numbers<[1], [0], [0], [1], [0, 0, 1, 1], [], []>} : vector<8x8xf32>, vector<8x648xf32>, vector<8x648xf32> -> vector<8x648xf32>
    %20 = arith.addf %15, %19 : vector<8x648xf32>
    %c4 = arith.constant 4 : index
    %c0_19 = arith.constant 0 : index
    %c0_20 = arith.constant 0 : index
    %21 = vector.load %arg1[%c4, %c0_19, %c0_20] : memref<9x8x8xf32, #tpu.memory_space<vmem>>, vector<1x8x8xf32>
    %22 = vector.shape_cast %21 : vector<1x8x8xf32> to vector<8x8xf32>
    %c0_21 = arith.constant 0 : index
    %c19 = arith.constant 19 : index
    %23 = vector.load %arg0[%c0_21, %c19] : memref<8x768xf32, #tpu.memory_space<vmem>>, vector<8x648xf32>
    %cst_22 = arith.constant dense<0.000000e+00> : vector<8x648xf32>
    %24 = tpu.matmul %22, %23, %cst_22 {dimension_numbers = #tpu.dot_dimension_numbers<[1], [0], [0], [1], [0, 0, 1, 1], [], []>} : vector<8x8xf32>, vector<8x648xf32>, vector<8x648xf32> -> vector<8x648xf32>
    %25 = arith.addf %20, %24 : vector<8x648xf32>
    %c5 = arith.constant 5 : index
    %c0_23 = arith.constant 0 : index
    %c0_24 = arith.constant 0 : index
    %26 = vector.load %arg1[%c5, %c0_23, %c0_24] : memref<9x8x8xf32, #tpu.memory_space<vmem>>, vector<1x8x8xf32>
    %27 = vector.shape_cast %26 : vector<1x8x8xf32> to vector<8x8xf32>
    %c0_25 = arith.constant 0 : index
    %c20 = arith.constant 20 : index
    %28 = vector.load %arg0[%c0_25, %c20] : memref<8x768xf32, #tpu.memory_space<vmem>>, vector<8x648xf32>
    %cst_26 = arith.constant dense<0.000000e+00> : vector<8x648xf32>
    %29 = tpu.matmul %27, %28, %cst_26 {dimension_numbers = #tpu.dot_dimension_numbers<[1], [0], [0], [1], [0, 0, 1, 1], [], []>} : vector<8x8xf32>, vector<8x648xf32>, vector<8x648xf32> -> vector<8x648xf32>
    %30 = arith.addf %25, %29 : vector<8x648xf32>
    %c6 = arith.constant 6 : index
    %c0_27 = arith.constant 0 : index
    %c0_28 = arith.constant 0 : index
    %31 = vector.load %arg1[%c6, %c0_27, %c0_28] : memref<9x8x8xf32, #tpu.memory_space<vmem>>, vector<1x8x8xf32>
    %32 = vector.shape_cast %31 : vector<1x8x8xf32> to vector<8x8xf32>
    %c0_29 = arith.constant 0 : index
    %c36 = arith.constant 36 : index
    %33 = vector.load %arg0[%c0_29, %c36] : memref<8x768xf32, #tpu.memory_space<vmem>>, vector<8x648xf32>
    %cst_30 = arith.constant dense<0.000000e+00> : vector<8x648xf32>
    %34 = tpu.matmul %32, %33, %cst_30 {dimension_numbers = #tpu.dot_dimension_numbers<[1], [0], [0], [1], [0, 0, 1, 1], [], []>} : vector<8x8xf32>, vector<8x648xf32>, vector<8x648xf32> -> vector<8x648xf32>
    %35 = arith.addf %30, %34 : vector<8x648xf32>
    %c7 = arith.constant 7 : index
    %c0_31 = arith.constant 0 : index
    %c0_32 = arith.constant 0 : index
    %36 = vector.load %arg1[%c7, %c0_31, %c0_32] : memref<9x8x8xf32, #tpu.memory_space<vmem>>, vector<1x8x8xf32>
    %37 = vector.shape_cast %36 : vector<1x8x8xf32> to vector<8x8xf32>
    %c0_33 = arith.constant 0 : index
    %c37 = arith.constant 37 : index
    %38 = vector.load %arg0[%c0_33, %c37] : memref<8x768xf32, #tpu.memory_space<vmem>>, vector<8x648xf32>
    %cst_34 = arith.constant dense<0.000000e+00> : vector<8x648xf32>
    %39 = tpu.matmul %37, %38, %cst_34 {dimension_numbers = #tpu.dot_dimension_numbers<[1], [0], [0], [1], [0, 0, 1, 1], [], []>} : vector<8x8xf32>, vector<8x648xf32>, vector<8x648xf32> -> vector<8x648xf32>
    %40 = arith.addf %35, %39 : vector<8x648xf32>
    %c8 = arith.constant 8 : index
    %c0_35 = arith.constant 0 : index
    %c0_36 = arith.constant 0 : index
    %41 = vector.load %arg1[%c8, %c0_35, %c0_36] : memref<9x8x8xf32, #tpu.memory_space<vmem>>, vector<1x8x8xf32>
    %42 = vector.shape_cast %41 : vector<1x8x8xf32> to vector<8x8xf32>
    %c0_37 = arith.constant 0 : index
    %c38 = arith.constant 38 : index
    %43 = vector.load %arg0[%c0_37, %c38] : memref<8x768xf32, #tpu.memory_space<vmem>>, vector<8x648xf32>
    %cst_38 = arith.constant dense<0.000000e+00> : vector<8x648xf32>
    %44 = tpu.matmul %42, %43, %cst_38 {dimension_numbers = #tpu.dot_dimension_numbers<[1], [0], [0], [1], [0, 0, 1, 1], [], []>} : vector<8x8xf32>, vector<8x648xf32>, vector<8x648xf32> -> vector<8x648xf32>
    %45 = arith.addf %40, %44 : vector<8x648xf32>
    %c0_39 = arith.constant 0 : index
    %c0_40 = arith.constant 0 : index
    %46 = vector.load %arg2[%c0_39, %c0_40] : memref<8x1xf32, #tpu.memory_space<vmem>>, vector<8x1xf32>
    %47 = vector.broadcast %46 : vector<8x1xf32> to vector<8x648xf32>
    %48 = arith.addf %45, %47 : vector<8x648xf32>
    %cst_41 = arith.constant 0.000000e+00 : f32
    %49 = vector.broadcast %cst_41 : f32 to vector<8x648xf32>
    %50 = arith.maximumf %48, %49 : vector<8x648xf32>
    %c0_42 = arith.constant 0 : index
    %c0_43 = arith.constant 0 : index
    %51 = vector.load %arg3[%c0_42, %c0_43] : memref<8x648xf32, #tpu.memory_space<vmem>>, vector<8x648xf32>
    tpu.vector_store %arg3[%c0_42, %c0_43], %50 {strides = array<i32>} : memref<8x648xf32, #tpu.memory_space<vmem>>, vector<8x648xf32>,
    return
  }
}

</mosaic_0001>

<bundles_post_ra>
// kernel: conv_layer.1
= control target key start
LH: loop header
LB: loop body
LE: loop exit
PB: predicated region body
PF: predicated region fallthrough
CT: control target
= control target key end

     0   :  { %v2296_v2 = vmov 0.0   ;;  %s2297_s16 = smov 127   ;;  %s2298_s25 = smov 126   ;;  %v2305_v7 = vmov 0   ;;  %vm41_vm0 = vcmask 1039360   ;;  %vm53_vm1 = vcmask 64512   ;;  %s2553_s0 = inlined_call_operand.vmem [shape: f32[8,768], index: 0, kind: input, shape index: {}]   ;;  %s2554_s2 = inlined_call_operand.vmem [shape: f32[8,1], index: 2, kind: input, shape index: {}]   ;;  %s2555_s1 = inlined_call_operand.vmem [shape: f32[9,8,8], index: 1, kind: input, shape index: {}]   ;;  %s2556_s3 = inlined_call_operand.vmem [shape: f32[8,648], index: 3, kind: output, shape index: {}]  }
   0x1   :  { %v2329_v0 = vld [vmem:[%s2553_s0 + $0x8] sm:$0xff]  ;;  %v2334_v1 = vld [vmem:[%s2553_s0] sm:$0xff]  ;;  %121 = vmatprep.mubr.f32.mxu0 %v2296_v2  ;;  %192 = vmatprep.mubr.f32.mxu1 %v2296_v2  ;;  %v2343_v3 = vld [vmem:[%s2553_s0 + $0x10] sm:$0xff]  ;;  %s2299_s26 = smov 110   ;;  %s2301_s27 = smov 108   ;;  %vm500_vm2 = vcmask 1031168  }
   0x2   :  { %31 = vrot.lane.b32.xlu0 %v2329_v0, %s2297_s16  ;;  %29 = vrot.lane.b32.xlu1 %v2334_v1, %s2297_s16  ;;  %v2348_v4 = vld [vmem:[%s2553_s0 + $0x18] sm:$0xff]  ;;  %v2355_v5 = vld [vmem:[%s2553_s0 + $0x20] sm:$0xff]  ;;  %s2302_s28 = smov 92   ;;  %s2303_s29 = smov 91   ;;  %vm748_vm3 = vcmask 900096   ;;  %vm996_vm4 = vcmask 891904  }
   0x3   :  { %v2360_v6 = vld [vmem:[%s2553_s0 + $0x28] sm:$0xff]  ;;  %s2300_s0 = smov 109   ;;  %s2304_s30 = smov 90   ;;  %2295 = vset.pattern.permute.xlu0 %v2305_v7  ;;  %v2222_v8 = vld [vmem:[%s2554_s2] sm:$0xff]  ;;  %v2257_v28 = vld [vmem:[%s2555_s1 + $0x10] sm:$0xff]  ;;  %vm1244_vm5 = vcmask 883712  }
   0x4   :  { %v2250_v14 = vld [vmem:[%s2555_s1 + $0x8] sm:$0xff]  ;;  %v14_v24 = vld [vmem:[%s2555_s1] sm:$0xff]  ;;  %v2261_v41 = vld [vmem:[%s2555_s1 + $0x18] sm:$0xff]  ;;  %vm1492_vm6 = vcmask 752640   ;;  %vm1740_vm7 = vcmask 744448   ;;  %vm1988_vm8 = vcmask 736256  }
   0x5   :  { %v2265_v51 = vld [vmem:[%s2555_s1 + $0x20] sm:$0xff] }
   0x6   :  { %33 = vrot.lane.b32.xlu0 %v2343_v3, %s2297_s16  ;;  %35 = vrot.lane.b32.xlu1 %v2348_v4, %s2297_s16 }
   0xa   :  { %37 = vrot.lane.b32.xlu0 %v2355_v5, %s2297_s16  ;;  %39 = vrot.lane.b32.xlu1 %v2360_v6, %s2297_s16 }
   0xe   :  { %490 = vrot.lane.b32.xlu0 %v2329_v0, %s2298_s25  ;;  %492 = vrot.lane.b32.xlu1 %v2343_v3, %s2298_s25 }
  0x12   :  { %488 = vrot.lane.b32.xlu0 %v2334_v1, %s2298_s25  ;;  %494 = vrot.lane.b32.xlu1 %v2348_v4, %s2298_s25 }
  0x16   :  { %496 = vrot.lane.b32.xlu0 %v2355_v5, %s2298_s25  ;;  %498 = vrot.lane.b32.xlu1 %v2360_v6, %s2298_s25 }
  0x1a   :  { %738 = vrot.lane.b32.xlu0 %v2329_v0, %s2299_s26  ;;  %740 = vrot.lane.b32.xlu1 %v2343_v3, %s2299_s26 }
  0x1e   :  { %742 = vrot.lane.b32.xlu0 %v2348_v4, %s2299_s26  ;;  %744 = vrot.lane.b32.xlu1 %v2355_v5, %s2299_s26 }
  0x22   :  { %736 = vrot.lane.b32.xlu0 %v2334_v1, %s2299_s26  ;;  %986 = vrot.lane.b32.xlu1 %v2329_v0, %s2300_s0 }
  0x26   :  { %988 = vrot.lane.b32.xlu0 %v2343_v3, %s2300_s0  ;;  %746 = vrot.lane.b32.xlu1 %v2360_v6, %s2299_s26 }
  0x2a   :  { %984 = vrot.lane.b32.xlu0 %v2334_v1, %s2300_s0  ;;  %990 = vrot.lane.b32.xlu1 %v2348_v4, %s2300_s0 }
  0x2e   :  { %992 = vrot.lane.b32.xlu0 %v2355_v5, %s2300_s0  ;;  %994 = vrot.lane.b32.xlu1 %v2360_v6, %s2300_s0 }
  0x32   :  { %1234 = vrot.lane.b32.xlu0 %v2329_v0, %s2301_s27  ;;  %1236 = vrot.lane.b32.xlu1 %v2343_v3, %s2301_s27 }
  0x36   :  { %1238 = vrot.lane.b32.xlu0 %v2348_v4, %s2301_s27  ;;  %1240 = vrot.lane.b32.xlu1 %v2355_v5, %s2301_s27 }
  0x3a   :  { %1232 = vrot.lane.b32.xlu0 %v2334_v1, %s2301_s27  ;;  %1482 = vrot.lane.b32.xlu1 %v2329_v0, %s2302_s28 }
  0x3e   :  { %1484 = vrot.lane.b32.xlu0 %v2343_v3, %s2302_s28  ;;  %1242 = vrot.lane.b32.xlu1 %v2360_v6, %s2301_s27 }
  0x42   :  { %1480 = vrot.lane.b32.xlu0 %v2334_v1, %s2302_s28  ;;  %1486 = vrot.lane.b32.xlu1 %v2348_v4, %s2302_s28 }
  0x46   :  { %1488 = vrot.lane.b32.xlu0 %v2355_v5, %s2302_s28  ;;  %1490 = vrot.lane.b32.xlu1 %v2360_v6, %s2302_s28 }
  0x4a   :  { %1730 = vrot.lane.b32.xlu0 %v2329_v0, %s2303_s29  ;;  %1732 = vrot.lane.b32.xlu1 %v2343_v3, %s2303_s29 }
  0x4e   :  { %1734 = vrot.lane.b32.xlu0 %v2348_v4, %s2303_s29  ;;  %1736 = vrot.lane.b32.xlu1 %v2355_v5, %s2303_s29 }
  0x52   :  { %1728 = vrot.lane.b32.xlu0 %v2334_v1, %s2303_s29  ;;  %1978 = vrot.lane.b32.xlu1 %v2329_v0, %s2304_s30 }
  0x56   :  { %1980 = vrot.lane.b32.xlu0 %v2343_v3, %s2304_s30  ;;  %1738 = vrot.lane.b32.xlu1 %v2360_v6, %s2303_s29 }
  0x5a   :  { %1976 = vrot.lane.b32.xlu0 %v2334_v1, %s2304_s30  ;;  %1982 = vrot.lane.b32.xlu1 %v2348_v4, %s2304_s30 }
  0x5e   :  { %1984 = vrot.lane.b32.xlu0 %v2355_v5, %s2304_s30  ;;  %1986 = vrot.lane.b32.xlu1 %v2360_v6, %s2304_s30 }
  0x62   :  { %2225 = vperm.xlu0 %2295, %v2222_v8  }
  0x74   :  { %v32_v9 = vpop.permute.xlu0 %31  ;;  %v30_v10 = vpop.permute.xlu1 %29 }
  0x75   :  { %v42_v15 = vsel %vm41_vm0, %v30_v10, %v32_v9 }
  0x78   :  { %v34_v11 = vpop.permute.xlu0 %33  ;;  %v36_v12 = vpop.permute.xlu1 %35 }
  0x79   :  { %v43_v13 = vsel %vm41_vm0, %v32_v9, %v34_v11  ;;  %v44_v20 = vsel %vm41_vm0, %v34_v11, %v36_v12 }
  0x7a   :  { %87 = vmatprep.subr.mxu0 %v43_v13 }
  0x7b   :  { %88 = vmatpush1.msra.mxu0 %v42_v15 }
  0x7c   :  { %v38_v16 = vpop.permute.xlu0 %37  ;;  %v40_v17 = vpop.permute.xlu1 %39  ;;  %2251 = vmatmul.mubr.msk.f32.vlgmr.msra.gmra.mxu0 %vm53_vm1, %v2250_v14 }
  0x7d   :  { %v46_v18 = vsel %vm41_vm0, %v38_v16, %v40_v17  ;;  %229 = vmatprep.subr.mxu0 %v40_v17  ;;  %v45_v19 = vsel %vm41_vm0, %v36_v12, %v38_v16  ;;  %263 = vmatprep.mubr.f32.mxu0 %v2296_v2  ;;  %v2273_v12 = vld [vmem:[%s2555_s1 + $0x30] sm:$0xff] }
  0x7e   :  { %158 = vmatprep.subr.mxu1 %v45_v19  ;;  %230 = vmatpush1.msra.mxu0 %v46_v18 }
  0x7f   :  { %159 = vmatpush1.msra.mxu1 %v44_v20  ;;  %374 = vmatprep.subr.mxu0 %v2348_v4 }
  0x80   :  { %v491_v21 = vpop.permute.xlu0 %490  ;;  %v493_v22 = vpop.permute.xlu1 %492  ;;  %2253 = vmatmul.mubr.msk.f32.vlgmr.msra.gmra.mxu0 %vm53_vm1, %v2250_v14  ;;  %2252 = vmatmul.mubr.msk.f32.vlgmr.msra.gmra.mxu1 %vm53_vm1, %v2250_v14 }
  0x81   :  { %375 = vmatpush1.msra.mxu0 %v2343_v3  ;;  %v502_v23 = vsel %vm500_vm2, %v491_v21, %v493_v22  ;;  %303 = vmatprep.subr.mxu1 %v2329_v0 }
  0x82   :  { %545 = vmatprep.subr.mxu0 %v502_v23  ;;  %408 = vmatprep.mubr.f32.mxu0 %v2296_v2 }
  0x83   :  { %304 = vmatpush1.msra.mxu1 %v2334_v1  ;;  %337 = vmatprep.mubr.f32.mxu1 %v2296_v2  ;;  %v2269_v1 = vld [vmem:[%s2555_s1 + $0x28] sm:$0xff] }
  0x84   :  { %v489_v25 = vpop.permute.xlu0 %488  ;;  %v495_v26 = vpop.permute.xlu1 %494  ;;  %2255 = vmatmul.mubr.msk.f32.vlgmr.msra.gmra.mxu0 %vm53_vm1, %v14_v24  ;;  %2254 = vmatmul.mubr.msk.f32.vlgmr.msra.gmra.mxu1 %vm53_vm1, %v14_v24 }
  0x85   :  { %v501_v27 = vsel %vm500_vm2, %v489_v25, %v491_v21  ;;  %445 = vmatprep.subr.mxu1 %v2360_v6  ;;  %579 = vmatprep.mubr.f32.mxu0 %v2296_v2  ;;  %v503_v33 = vsel %vm500_vm2, %v493_v22, %v495_v26 }
  0x86   :  { %546 = vmatpush1.msra.mxu0 %v501_v27  ;;  %446 = vmatpush1.msra.mxu1 %v2355_v5 }
  0x87   :  { %479 = vmatprep.mubr.f32.mxu1 %v2296_v2 }
  0x88   :  { %v497_v29 = vpop.permute.xlu0 %496  ;;  %v499_v30 = vpop.permute.xlu1 %498  ;;  %2258 = vmatmul.mubr.msk.f32.vlgmr.msra.gmra.mxu0 %vm53_vm1, %v2257_v28  ;;  %2256 = vmatmul.mubr.msk.f32.vlgmr.msra.gmra.mxu1 %vm53_vm1, %v14_v24 }
  0x89   :  { %v505_v31 = vsel %vm500_vm2, %v497_v29, %v499_v30  ;;  %687 = vmatprep.subr.mxu0 %v499_v30  ;;  %v504_v32 = vsel %vm500_vm2, %v495_v26, %v497_v29  ;;  %721 = vmatprep.mubr.f32.mxu0 %v2296_v2  ;;  %v2277_v26 = vld [vmem:[%s2555_s1 + $0x38] sm:$0xff] }
  0x8a   :  { %616 = vmatprep.subr.mxu1 %v504_v32  ;;  %688 = vmatpush1.msra.mxu0 %v505_v31 }
  0x8b   :  { %617 = vmatpush1.msra.mxu1 %v503_v33  ;;  %650 = vmatprep.mubr.f32.mxu1 %v2296_v2 }
  0x8c   :  { %v739_v34 = vpop.permute.xlu0 %738  ;;  %v741_v35 = vpop.permute.xlu1 %740  ;;  %2260 = vmatmul.mubr.msk.f32.vlgmr.msra.gmra.mxu0 %vm53_vm1, %v2257_v28  ;;  %2259 = vmatmul.mubr.msk.f32.vlgmr.msra.gmra.mxu1 %vm53_vm1, %v2257_v28 }
  0x8d   :  { %v750_v36 = vsel %vm748_vm3, %v739_v34, %v741_v35  ;;  %827 = vmatprep.mubr.f32.mxu1 %v2296_v2  ;;  %898 = vmatprep.mubr.f32.mxu0 %v2296_v2 }
  0x8e   :  { %793 = vmatprep.subr.mxu1 %v750_v36  ;;  %v2281_v36 = vld [vmem:[%s2555_s1 + $0x40] sm:$0xff] }
  0x90   :  { %v743_v37 = vpop.permute.xlu0 %742  ;;  %v745_v38 = vpop.permute.xlu1 %744 }
  0x91   :  { %v751_v39 = vsel %vm748_vm3, %v741_v35, %v743_v37  ;;  %v752_v40 = vsel %vm748_vm3, %v743_v37, %v745_v38 }
  0x92   :  { %864 = vmatprep.subr.mxu0 %v752_v40 }
  0x93   :  { %865 = vmatpush1.msra.mxu0 %v751_v39 }
  0x94   :  { %v737_v42 = vpop.permute.xlu0 %736  ;;  %v987_v43 = vpop.permute.xlu1 %986  ;;  %2263 = vmatmul.mubr.msk.f32.vlgmr.msra.gmra.mxu0 %vm53_vm1, %v2261_v41 }
  0x95   :  { %v749_v44 = vsel %vm748_vm3, %v737_v42, %v739_v34  ;;  %1075 = vmatprep.mubr.f32.mxu0 %v2296_v2 }
  0x96   :  { %794 = vmatpush1.msra.mxu1 %v749_v44 }
  0x97   :  { %2262 = vmatmul.mubr.msk.f32.vlgmr.msra.gmra.mxu1 %vm53_vm1, %v2261_v41 }
  0x98   :  { %v989_v45 = vpop.permute.xlu0 %988  ;;  %v747_v46 = vpop.permute.xlu1 %746  ;;  %969 = vmatprep.mubr.f32.mxu1 %v2296_v2 }
  0x99   :  { %v753_v47 = vsel %vm748_vm3, %v745_v38, %v747_v46  ;;  %935 = vmatprep.subr.mxu1 %v747_v46  ;;  %v998_v48 = vsel %vm996_vm4, %v987_v43, %v989_v45 }
  0x9a   :  { %936 = vmatpush1.msra.mxu1 %v753_v47  ;;  %1041 = vmatprep.subr.mxu0 %v998_v48 }
  0x9b   :  { %2264 = vmatmul.mubr.msk.f32.vlgmr.msra.gmra.mxu1 %vm53_vm1, %v2261_v41 }
  0x9c   :  { %v985_v49 = vpop.permute.xlu0 %984  ;;  %v991_v50 = vpop.permute.xlu1 %990  ;;  %1146 = vmatprep.mubr.f32.mxu1 %v2296_v2 }
  0x9d   :  { %v997_v52 = vsel %vm996_vm4, %v985_v49, %v987_v43  ;;  %v999_v57 = vsel %vm996_vm4, %v989_v45, %v991_v50 }
  0x9e   :  { %1042 = vmatpush1.msra.mxu0 %v997_v52 }
  0x9f   :  { %2266 = vmatmul.mubr.msk.f32.vlgmr.msra.gmra.mxu0 %vm53_vm1, %v2265_v51 }
  0xa0   :  { %v993_v53 = vpop.permute.xlu0 %992  ;;  %v995_v54 = vpop.permute.xlu1 %994  ;;  %1217 = vmatprep.mubr.f32.mxu0 %v2296_v2 }
  0xa1   :  { %v1001_v55 = vsel %vm996_vm4, %v993_v53, %v995_v54  ;;  %1183 = vmatprep.subr.mxu0 %v995_v54  ;;  %v1000_v56 = vsel %vm996_vm4, %v991_v50, %v993_v53 }
  0xa2   :  { %1112 = vmatprep.subr.mxu1 %v1000_v56  ;;  %1184 = vmatpush1.msra.mxu0 %v1001_v55 }
  0xa3   :  { %1113 = vmatpush1.msra.mxu1 %v999_v57  ;;  %2268 = vmatmul.mubr.msk.f32.vlgmr.msra.gmra.mxu0 %vm53_vm1, %v2265_v51 }
  0xa4   :  { %v1235_v58 = vpop.permute.xlu0 %1234  ;;  %v1237_v59 = vpop.permute.xlu1 %1236  ;;  %2267 = vmatmul.mubr.msk.f32.vlgmr.msra.gmra.mxu1 %vm53_vm1, %v2265_v51  ;;  %1394 = vmatprep.mubr.f32.mxu0 %v2296_v2 }
  0xa5   :  { %v1246_v60 = vsel %vm1244_vm5, %v1235_v58, %v1237_v59  ;;  %1323 = vmatprep.mubr.f32.mxu1 %v2296_v2 }
  0xa6   :  { %1289 = vmatprep.subr.mxu1 %v1246_v60 }
  0xa8   :  { %v1239_v61 = vpop.permute.xlu0 %1238  ;;  %v1241_v62 = vpop.permute.xlu1 %1240 }
  0xa9   :  { %v1247_v63 = vsel %vm1244_vm5, %v1237_v59, %v1239_v61  ;;  %v1248_v0 = vsel %vm1244_vm5, %v1239_v61, %v1241_v62 }
  0xaa   :  { %1360 = vmatprep.subr.mxu0 %v1248_v0 }
  0xab   :  { %1361 = vmatpush1.msra.mxu0 %v1247_v63 }
  0xac   :  { %v1233_v3 = vpop.permute.xlu0 %1232  ;;  %v1483_v4 = vpop.permute.xlu1 %1482  ;;  %2271 = vmatmul.mubr.msk.f32.vlgmr.msra.gmra.mxu0 %vm53_vm1, %v2269_v1 }
  0xad   :  { %v1245_v5 = vsel %vm1244_vm5, %v1233_v3, %v1235_v58  ;;  %1571 = vmatprep.mubr.f32.mxu0 %v2296_v2 }
  0xae   :  { %1290 = vmatpush1.msra.mxu1 %v1245_v5 }
  0xaf   :  { %2270 = vmatmul.mubr.msk.f32.vlgmr.msra.gmra.mxu1 %vm53_vm1, %v2269_v1 }
  0xb0   :  { %v1485_v6 = vpop.permute.xlu0 %1484  ;;  %v1243_v7 = vpop.permute.xlu1 %1242  ;;  %1465 = vmatprep.mubr.f32.mxu1 %v2296_v2 }
  0xb1   :  { %v1249_v8 = vsel %vm1244_vm5, %v1241_v62, %v1243_v7  ;;  %1431 = vmatprep.subr.mxu1 %v1243_v7  ;;  %v1494_v9 = vsel %vm1492_vm6, %v1483_v4, %v1485_v6 }
  0xb2   :  { %1432 = vmatpush1.msra.mxu1 %v1249_v8  ;;  %1537 = vmatprep.subr.mxu0 %v1494_v9 }
  0xb3   :  { %2272 = vmatmul.mubr.msk.f32.vlgmr.msra.gmra.mxu1 %vm53_vm1, %v2269_v1 }
  0xb4   :  { %v1481_v10 = vpop.permute.xlu0 %1480  ;;  %v1487_v11 = vpop.permute.xlu1 %1486  ;;  %1642 = vmatprep.mubr.f32.mxu1 %v2296_v2 }
  0xb5   :  { %v1493_v13 = vsel %vm1492_vm6, %v1481_v10, %v1483_v4  ;;  %v1495_v18 = vsel %vm1492_vm6, %v1485_v6, %v1487_v11 }
  0xb6   :  { %1538 = vmatpush1.msra.mxu0 %v1493_v13 }
  0xb7   :  { %2274 = vmatmul.mubr.msk.f32.vlgmr.msra.gmra.mxu0 %vm53_vm1, %v2273_v12 }
  0xb8   :  { %v1489_v14 = vpop.permute.xlu0 %1488  ;;  %v1491_v15 = vpop.permute.xlu1 %1490  ;;  %1713 = vmatprep.mubr.f32.mxu0 %v2296_v2 }
  0xb9   :  { %v1497_v16 = vsel %vm1492_vm6, %v1489_v14, %v1491_v15  ;;  %1679 = vmatprep.subr.mxu0 %v1491_v15  ;;  %v1496_v17 = vsel %vm1492_vm6, %v1487_v11, %v1489_v14 }
  0xba   :  { %1608 = vmatprep.subr.mxu1 %v1496_v17  ;;  %1680 = vmatpush1.msra.mxu0 %v1497_v16 }
  0xbb   :  { %1609 = vmatpush1.msra.mxu1 %v1495_v18  ;;  %2276 = vmatmul.mubr.msk.f32.vlgmr.msra.gmra.mxu0 %vm53_vm1, %v2273_v12 }
  0xbc   :  { %v1731_v19 = vpop.permute.xlu0 %1730  ;;  %2275 = vmatmul.mubr.msk.f32.vlgmr.msra.gmra.mxu1 %vm53_vm1, %v2273_v12  ;;  %v1733_v20 = vpop.permute.xlu1 %1732  ;;  %1890 = vmatprep.mubr.f32.mxu0 %v2296_v2 }
  0xbd   :  { %v1742_v21 = vsel %vm1740_vm7, %v1731_v19, %v1733_v20  ;;  %1819 = vmatprep.mubr.f32.mxu1 %v2296_v2 }
  0xbe   :  { %1785 = vmatprep.subr.mxu1 %v1742_v21 }
  0xc0   :  { %v1735_v22 = vpop.permute.xlu0 %1734  ;;  %v1737_v23 = vpop.permute.xlu1 %1736 }
  0xc1   :  { %v1743_v24 = vsel %vm1740_vm7, %v1733_v20, %v1735_v22  ;;  %v1744_v25 = vsel %vm1740_vm7, %v1735_v22, %v1737_v23 }
  0xc2   :  { %1856 = vmatprep.subr.mxu0 %v1744_v25 }
  0xc3   :  { %1857 = vmatpush1.msra.mxu0 %v1743_v24 }
  0xc4   :  { %v1729_v27 = vpop.permute.xlu0 %1728  ;;  %2279 = vmatmul.mubr.msk.f32.vlgmr.msra.gmra.mxu0 %vm53_vm1, %v2277_v26  ;;  %v1979_v28 = vpop.permute.xlu1 %1978 }
  0xc5   :  { %v1741_v29 = vsel %vm1740_vm7, %v1729_v27, %v1731_v19  ;;  %2067 = vmatprep.mubr.f32.mxu0 %v2296_v2 }
  0xc6   :  { %1786 = vmatpush1.msra.mxu1 %v1741_v29 }
  0xc7   :  { %2278 = vmatmul.mubr.msk.f32.vlgmr.msra.gmra.mxu1 %vm53_vm1, %v2277_v26 }
  0xc8   :  { %v1981_v30 = vpop.permute.xlu0 %1980  ;;  %v1739_v31 = vpop.permute.xlu1 %1738  ;;  %1961 = vmatprep.mubr.f32.mxu1 %v2296_v2 }
  0xc9   :  { %v1745_v32 = vsel %vm1740_vm7, %v1737_v23, %v1739_v31  ;;  %1927 = vmatprep.subr.mxu1 %v1739_v31  ;;  %v1990_v33 = vsel %vm1988_vm8, %v1979_v28, %v1981_v30 }
  0xca   :  { %1928 = vmatpush1.msra.mxu1 %v1745_v32  ;;  %2033 = vmatprep.subr.mxu0 %v1990_v33 }
  0xcb   :  { %2280 = vmatmul.mubr.msk.f32.vlgmr.msra.gmra.mxu1 %vm53_vm1, %v2277_v26 }
  0xcc   :  { %v1977_v34 = vpop.permute.xlu0 %1976  ;;  %v1983_v35 = vpop.permute.xlu1 %1982  ;;  %2138 = vmatprep.mubr.f32.mxu1 %v2296_v2 }
  0xcd   :  { %v1989_v37 = vsel %vm1988_vm8, %v1977_v34, %v1979_v28  ;;  %v1991_v42 = vsel %vm1988_vm8, %v1981_v30, %v1983_v35 }
  0xce   :  { %2034 = vmatpush1.msra.mxu0 %v1989_v37 }
  0xcf   :  { %2282 = vmatmul.mubr.msk.f32.vlgmr.msra.gmra.mxu0 %vm53_vm1, %v2281_v36 }
  0xd0   :  { %v1985_v38 = vpop.permute.xlu0 %1984  ;;  %v1987_v39 = vpop.permute.xlu1 %1986  ;;  %2209 = vmatprep.mubr.f32.mxu0 %v2296_v2 }
  0xd1   :  { %v1993_v40 = vsel %vm1988_vm8, %v1985_v38, %v1987_v39  ;;  %2175 = vmatprep.subr.mxu0 %v1987_v39  ;;  %v1992_v41 = vsel %vm1988_vm8, %v1983_v35, %v1985_v38 }
  0xd2   :  { %2104 = vmatprep.subr.mxu1 %v1992_v41  ;;  %2176 = vmatpush1.msra.mxu0 %v1993_v40 }
  0xd3   :  { %2105 = vmatpush1.msra.mxu1 %v1991_v42  ;;  %2284 = vmatmul.mubr.msk.f32.vlgmr.msra.gmra.mxu0 %vm53_vm1, %v2281_v36 }
  0xd4   :  { %2283 = vmatmul.mubr.msk.f32.vlgmr.msra.gmra.mxu1 %vm53_vm1, %v2281_v36 }
 0x13c   :  { %v123_v43 = vpop.f32.mrf.mxu0 }
 0x13e   :  { %v125_v44 = vpop.f32.mrf.mxu0 }
 0x140   :  { %v265_v45 = vpop.f32.mrf.mxu0  ;;  %v194_v46 = vpop.f32.mrf.mxu1 }
 0x142   :  { %v267_v47 = vpop.f32.mrf.mxu0  ;;  %v196_v2 = vpop.f32.mrf.mxu1 }
 0x144   :  { %v410_v48 = vpop.f32.mrf.mxu0  ;;  %v339_v49 = vpop.f32.mrf.mxu1 }
 0x145   :  { %v340_v15 = vadd.f32 %v339_v49, %v123_v43  ;;  %v411_v17 = vadd.f32 %v410_v48, %v194_v46 }
 0x146   :  { %v412_v50 = vpop.f32.mrf.mxu0  ;;  %v341_v51 = vpop.f32.mrf.mxu1 }
 0x147   :  { %v342_v16 = vadd.f32 %v341_v51, %v125_v44  ;;  %v413_v25 = vadd.f32 %v412_v50, %v196_v2 }
 0x148   :  { %v581_v52 = vpop.f32.mrf.mxu0  ;;  %v481_v53 = vpop.f32.mrf.mxu1 }
 0x149   :  { %v728_v20 = vadd.f32 %v581_v52, %v340_v15  ;;  %v482_v21 = vadd.f32 %v481_v53, %v265_v45 }
 0x14a   :  { %v583_v54 = vpop.f32.mrf.mxu0  ;;  %v483_v55 = vpop.f32.mrf.mxu1 }
 0x14b   :  { %v729_v23 = vadd.f32 %v583_v54, %v342_v16  ;;  %v484_v24 = vadd.f32 %v483_v55, %v267_v47 }
 0x14c   :  { %v723_v56 = vpop.f32.mrf.mxu0  ;;  %v652_v57 = vpop.f32.mrf.mxu1 }
 0x14d   :  { %v730_v26 = vadd.f32 %v652_v57, %v411_v17  ;;  %v732_v28 = vadd.f32 %v723_v56, %v482_v21  ;;  %v2226_v57 = vpop.permute.xlu0 %2225 }
 0x14e   :  { %v725_v58 = vpop.f32.mrf.mxu0  ;;  %v654_v59 = vpop.f32.mrf.mxu1 }
 0x14f   :  { %v733_v31 = vadd.f32 %v725_v58, %v484_v24  ;;  %v731_v33 = vadd.f32 %v654_v59, %v413_v25 }
 0x154   :  { %v900_v60 = vpop.f32.mrf.mxu0 }
 0x155   :  { %v978_v34 = vadd.f32 %v900_v60, %v730_v26 }
 0x156   :  { %v902_v62 = vpop.f32.mrf.mxu0 }
 0x157   :  { %v829_v61 = vpop.f32.mrf.mxu1  ;;  %v979_v44 = vadd.f32 %v902_v62, %v731_v33 }
 0x158   :  { %v976_v29 = vadd.f32 %v829_v61, %v728_v20 }
 0x159   :  { %v831_v63 = vpop.f32.mrf.mxu1 }
 0x15a   :  { %v977_v32 = vadd.f32 %v831_v63, %v729_v23 }
 0x15b   :  { %v971_v1 = vpop.f32.mrf.mxu1 }
 0x15c   :  { %v980_v38 = vadd.f32 %v971_v1, %v732_v28 }
 0x15d   :  { %v973_v4 = vpop.f32.mrf.mxu1 }
 0x15e   :  { %v981_v42 = vadd.f32 %v973_v4, %v733_v31 }
 0x15f   :  { %v1077_v0 = vpop.f32.mrf.mxu0 }
 0x160   :  { %v1224_v37 = vadd.f32 %v1077_v0, %v976_v29 }
 0x161   :  { %v1079_v3 = vpop.f32.mrf.mxu0 }
 0x162   :  { %v1225_v41 = vadd.f32 %v1079_v3, %v977_v32 }
 0x163   :  { %v1219_v5 = vpop.f32.mrf.mxu0 }
 0x164   :  { %v1148_v6 = vpop.f32.mrf.mxu1  ;;  %v1228_v46 = vadd.f32 %v1219_v5, %v980_v38 }
 0x165   :  { %v1221_v7 = vpop.f32.mrf.mxu0  ;;  %v1226_v45 = vadd.f32 %v1148_v6, %v978_v34 }
 0x166   :  { %v1150_v8 = vpop.f32.mrf.mxu1  ;;  %v1229_v50 = vadd.f32 %v1221_v7, %v981_v42 }
 0x167   :  { %v1227_v54 = vadd.f32 %v1150_v8, %v979_v44 }
 0x16c   :  { %v1396_v10 = vpop.f32.mrf.mxu0 }
 0x16d   :  { %v1474_v55 = vadd.f32 %v1396_v10, %v1226_v45 }
 0x16e   :  { %v1398_v12 = vpop.f32.mrf.mxu0 }
 0x16f   :  { %v1325_v9 = vpop.f32.mrf.mxu1  ;;  %v1475_v63 = vadd.f32 %v1398_v12, %v1227_v54 }
 0x170   :  { %v1472_v43 = vadd.f32 %v1325_v9, %v1224_v37 }
 0x171   :  { %v1327_v11 = vpop.f32.mrf.mxu1 }
 0x172   :  { %v1473_v47 = vadd.f32 %v1327_v11, %v1225_v41 }
 0x173   :  { %v1467_v13 = vpop.f32.mrf.mxu1 }
 0x174   :  { %v1476_v51 = vadd.f32 %v1467_v13, %v1228_v46 }
 0x175   :  { %v1469_v18 = vpop.f32.mrf.mxu1 }
 0x176   :  { %v1477_v58 = vadd.f32 %v1469_v18, %v1229_v50 }
 0x177   :  { %v1573_v14 = vpop.f32.mrf.mxu0 }
 0x178   :  { %v1720_v2 = vadd.f32 %v1573_v14, %v1472_v43 }
 0x179   :  { %v1575_v19 = vpop.f32.mrf.mxu0 }
 0x17a   :  { %v1721_v52 = vadd.f32 %v1575_v19, %v1473_v47 }
 0x17b   :  { %v1715_v27 = vpop.f32.mrf.mxu0 }
 0x17c   :  { %v1644_v22 = vpop.f32.mrf.mxu1  ;;  %v1724_v59 = vadd.f32 %v1715_v27, %v1476_v51 }
 0x17d   :  { %v1717_v35 = vpop.f32.mrf.mxu0  ;;  %v1722_v62 = vadd.f32 %v1644_v22, %v1474_v55 }
 0x17e   :  { %v1646_v30 = vpop.f32.mrf.mxu1  ;;  %v1725_v3 = vadd.f32 %v1717_v35, %v1477_v58 }
 0x17f   :  { %v1723_v7 = vadd.f32 %v1646_v30, %v1475_v63 }
 0x184   :  { %v1892_v39 = vpop.f32.mrf.mxu0 }
 0x185   :  { %v1970_v9 = vadd.f32 %v1892_v39, %v1722_v62 }
 0x186   :  { %v1894_v48 = vpop.f32.mrf.mxu0 }
 0x187   :  { %v1821_v36 = vpop.f32.mrf.mxu1  ;;  %v1971_v16 = vadd.f32 %v1894_v48, %v1723_v7 }
 0x188   :  { %v1968_v53 = vadd.f32 %v1821_v36, %v1720_v2 }
 0x189   :  { %v1823_v40 = vpop.f32.mrf.mxu1 }
 0x18a   :  { %v1969_v60 = vadd.f32 %v1823_v40, %v1721_v52 }
 0x18b   :  { %v1963_v49 = vpop.f32.mrf.mxu1 }
 0x18c   :  { %v1972_v4 = vadd.f32 %v1963_v49, %v1724_v59 }
 0x18d   :  { %v1965_v0 = vpop.f32.mrf.mxu1 }
 0x18e   :  { %v1973_v13 = vadd.f32 %v1965_v0, %v1725_v3 }
 0x18f   :  { %v2069_v56 = vpop.f32.mrf.mxu0 }
 0x190   :  { %v2216_v61 = vadd.f32 %v2069_v56, %v1968_v53 }
 0x191   :  { %v2071_v1 = vpop.f32.mrf.mxu0 }
 0x192   :  { %v2228_v5 = vadd.f32 %v2226_v57, %v2216_v61  ;;  %v2217_v6 = vadd.f32 %v2071_v1, %v1969_v60 }
 0x193   :  { %v2211_v11 = vpop.f32.mrf.mxu0 }
 0x194   :  { %v2234_v8 = vmax.f32 %v2228_v5, 0.0  ;;  %v2229_v10 = vadd.f32 %v2226_v57, %v2217_v6  ;;  %v2220_v14 = vadd.f32 %v2211_v11, %v1972_v4  ;;  %v2140_v15 = vpop.f32.mrf.mxu1 }
 0x195   :  { %v2218_v17 = vadd.f32 %v2140_v15, %v1970_v9  ;;  %v2213_v18 = vpop.f32.mrf.mxu0 }
 0x196   :  { %2240 = vst [vmem:[%s2556_s3] sm:$0xff] %v2234_v8  ;;  %v2235_v12 = vmax.f32 %v2229_v10, 0.0  ;;  %v2232_v19 = vadd.f32 %v2226_v57, %v2220_v14  ;;  %v2221_v20 = vadd.f32 %v2213_v18, %v1973_v13  ;;  %v2142_v21 = vpop.f32.mrf.mxu1 }
 0x197   :  { %v2230_v22 = vadd.f32 %v2226_v57, %v2218_v17  ;;  %v2219_v23 = vadd.f32 %v2142_v21, %v1971_v16 }
 0x198   :  { %2241 = vst [vmem:[%s2556_s3 + $0x8] sm:$0xff] %v2235_v12  ;;  %v2238_v24 = vmax.f32 %v2232_v19, 0.0  ;;  %v2233_v25 = vadd.f32 %v2226_v57, %v2221_v20 }
 0x199   :  { %v2236_v26 = vmax.f32 %v2230_v22, 0.0  ;;  %v2231_v27 = vadd.f32 %v2226_v57, %v2219_v23 }
 0x19a   :  { %2244 = vst [vmem:[%s2556_s3 + $0x20] sm:$0xff] %v2238_v24  ;;  %v2239_v28 = vmax.f32 %v2233_v25, 0.0 }
 0x19b   :  { %2242 = vst [vmem:[%s2556_s3 + $0x10] sm:$0xff] %v2236_v26  ;;  %v2237_v29 = vmax.f32 %v2231_v27, 0.0 }
 0x19c   :  { %2245 = vst.msk [vmem:[%s2556_s3 + $0x28] sm:$0xff] %vm53_vm1, %v2239_v28 }
 0x19d   :  { %2243 = vst [vmem:[%s2556_s3 + $0x18] sm:$0xff] %v2237_v29 }

</bundles_post_ra>
